<compile_context>
chip_gen: v6e
topology: v6e:2x2x1
jax: 0.10.0
libtpu: 0.0.40
codegen_flags: <defaults>
</compile_context>

<pallas_src>
import jax
import jax.numpy as jnp
from jax import lax
from jax.experimental import pallas as pl
from jax.experimental.pallas import tpu as pltpu

LATENT_DIM = 50
HIDDENS = (64, 32, 16, 1)


def _discriminator_z_kernel(x_ref,
                            w1_ref, b1_ref,
                            w2_ref, b2_ref,
                            w3_ref, b3_ref,
                            w4_ref, b4_ref,
                            o_ref):
    x = x_ref[...]                                   # (TB, 50) native row-major z block
    # Layer 1: contract the feature axis of both operands -> (64, TB).
    # (Equivalent to W1 @ x^T; Mosaic handles the operand layout.)
    h = lax.dot_general(w1_ref[...], x,
                        dimension_numbers=(((1,), (1,)), ((), ())),
                        preferred_element_type=jnp.float32)
    h = jnp.maximum(h + b1_ref[...], 0.0)            # (64, TB)
    # Layer 2: (32, 64) @ (64, TB) -> (32, TB)
    h = jnp.dot(w2_ref[...], h, preferred_element_type=jnp.float32)
    h = jnp.maximum(h + b2_ref[...], 0.0)
    # Layer 3: (16, 32) @ (32, TB) -> (16, TB)
    h = jnp.dot(w3_ref[...], h, preferred_element_type=jnp.float32)
    h = jnp.maximum(h + b3_ref[...], 0.0)
    # Layer 4 (out_features == 1): VPU multiply + sublane reduce instead of a
    # degenerate M=1 MXU matmul, fused into the sigmoid epilogue.
    logits = jnp.sum(h * w4_ref[...], axis=0, keepdims=True) + b4_ref[...]
    o_ref[...] = jax.nn.sigmoid(logits)              # (1, TB): lane-dense store


def _choose_tb(batch, *, cap=8192, target_steps=4):
    """Lane-dense batch tile: multiple of 128, >=128, capped at `cap`.

    Aims for >= `target_steps` grid steps when the batch permits so v7x gets at
    least 2 steps per TensorCore and the DMA/compute pipeline actually overlaps.
    """
    padded = pl.cdiv(batch, 128) * 128
    tb = pl.cdiv(pl.cdiv(padded, target_steps), 128) * 128
    return int(max(128, min(cap, tb)))


def discriminator_z_forward(z, params, *, tb=None):
    """z: (B, LATENT_DIM), f32 (or bf16 if it already arrives that way).

    params: list of (W, b) in PyTorch nn.Linear layout: W (out, in), b (out,).
    Returns (B, 1) f32 probabilities, matching the PyTorch module.
    """
    B, d = z.shape
    assert d == LATENT_DIM, f"expected latent dim {LATENT_DIM}, got {d}"
    if tb is None:
        tb = _choose_tb(B)
    assert tb >= 128 and tb % 128 == 0, "tb must be a positive multiple of 128"

    (w1, b1), (w2, b2), (w3, b3), (w4, b4) = params
    # Layer-1 weight matches the streamed z dtype (bf16 MXU path only if z is
    # already bf16 upstream; we never add a standalone cast pass over z).
    w1k = w1.astype(z.dtype)                         # (64, 50)
    b1k = b1.reshape(-1, 1).astype(jnp.float32)      # (64, 1) f32 bias (lane broadcast)
    w2k = w2.astype(jnp.float32)                     # (32, 64)
    b2k = b2.reshape(-1, 1).astype(jnp.float32)      # (32, 1)
    w3k = w3.astype(jnp.float32)                     # (16, 32)
    b3k = b3.reshape(-1, 1).astype(jnp.float32)      # (16, 1)
    w4k = w4.reshape(-1, 1).astype(jnp.float32)      # (16, 1) column for VPU path
    b4k = b4.reshape(1, 1).astype(jnp.float32)       # (1, 1)

    grid = (pl.cdiv(B, tb),)                         # ragged final tile handled by Pallas

    def resident(a):
        # Full-array block, constant index -> stays VMEM-resident across grid steps.
        return pl.BlockSpec(a.shape, lambda i: (0, 0))

    # Rough per-step VMEM estimate (double-buffered z tile + output + f32
    # activations/temps).  Only raise the scoped limit when a large user tb
    # would exceed the v5e default of 16 MiB.
    est_bytes = tb * (2 * LATENT_DIM * z.dtype.itemsize
                      + 2 * 4
                      + 8 * (64 + 32 + 16 + 1)) + (1 << 20)
    vmem_limit = None
    if est_bytes > (16 << 20):
        vmem_limit = int(min(max(32 << 20, 2 * est_bytes), 64 << 20))

    out = pl.pallas_call(
        _discriminator_z_kernel,
        out_shape=jax.ShapeDtypeStruct((1, B), jnp.float32),
        grid=grid,
        in_specs=[
            pl.BlockSpec((tb, LATENT_DIM), lambda i: (i, 0)),   # native-layout z stream
            resident(w1k), resident(b1k),
            resident(w2k), resident(b2k),
            resident(w3k), resident(b3k),
            resident(w4k), resident(b4k),
        ],
        out_specs=pl.BlockSpec((1, tb), lambda i: (0, i)),
        compiler_params=pltpu.CompilerParams(
            dimension_semantics=("parallel",),                  # megacore sharding on v7x
            vmem_limit_bytes=vmem_limit),
    )(z, w1k, b1k, w2k, b2k, w3k, b3k, w4k, b4k)

    # (1, B) lane-dense kernel output -> PyTorch layout (B, 1).
    return out[0].reshape(B, 1)


def init_params(key):
    """nn.Linear default init: uniform(-1/sqrt(fan_in), 1/sqrt(fan_in)); PyTorch layout."""
    params = []
    in_dim = LATENT_DIM
    for out_dim in HIDDENS:
        key, kw, kb = jax.random.split(key, 3)
        bound = 1.0 / jnp.sqrt(jnp.float32(in_dim))
        w = jax.random.uniform(kw, (out_dim, in_dim), jnp.float32, -bound, bound)
        b = jax.random.uniform(kb, (out_dim,), jnp.float32, -bound, bound)
        params.append((w, b))
        in_dim = out_dim
    return params


def _reference(z, params):
    h = z.astype(jnp.float32)
    for i, (w, b) in enumerate(params):
        h = h @ w.T + b
        if i < len(params) - 1:
            h = jnp.maximum(h, 0.0)
    return jax.nn.sigmoid(h)


if __name__ == "__main__":
    key = jax.random.PRNGKey(0)
    key, kz_small, kz_big = jax.random.split(key, 3)
    params = init_params(key)

    # Small batch: single grid step, ragged (8-row) input block, masked output edge.
    B = 8
    z = jax.random.normal(kz_small, (B, LATENT_DIM), jnp.float32)
    ref = _reference(z, params)

    out = jax.block_until_ready(discriminator_z_forward(z, params))
    assert out.shape == (B, 1)
    assert jnp.allclose(out, ref, atol=1e-5, rtol=1e-5)

    # bf16-upstream path: z already bf16, no standalone cast pass inserted.
    out_bf16 = jax.block_until_ready(
        discriminator_z_forward(z.astype(jnp.bfloat16), params))
    assert jnp.allclose(out_bf16, ref, atol=2e-2, rtol=0.0)

    # Larger batch exercising the tiled grid (grid=(3,), 300 = 2*128 + 44 ragged
    # tail) with VMEM-resident weights across steps.
    B2 = 300
    z2 = jax.random.normal(kz_big, (B2, LATENT_DIM), jnp.float32)
    ref2 = _reference(z2, params)
    out2 = jax.block_until_ready(discriminator_z_forward(z2, params, tb=128))
    assert out2.shape == (B2, 1)
    assert jnp.allclose(out2, ref2, atol=1e-5, rtol=1e-5)

    print("KERNEL_OK")
</pallas_src>

<mosaic_0001>
module attributes {stable_mosaic.version = 11 : i64} {
  func.func @_discriminator_z_kernel(%arg0: i32, %arg1: memref<128x50xf32, #tpu.memory_space<vmem>>, %arg2: memref<64x50xf32, #tpu.memory_space<vmem>>, %arg3: memref<64x1xf32, #tpu.memory_space<vmem>>, %arg4: memref<32x64xf32, #tpu.memory_space<vmem>>, %arg5: memref<32x1xf32, #tpu.memory_space<vmem>>, %arg6: memref<16x32xf32, #tpu.memory_space<vmem>>, %arg7: memref<16x1xf32, #tpu.memory_space<vmem>>, %arg8: memref<16x1xf32, #tpu.memory_space<vmem>>, %arg9: memref<1x1xf32, #tpu.memory_space<vmem>>, %arg10: memref<1x128xf32, #tpu.memory_space<vmem>>) attributes {dimension_semantics = [#tpu.dimension_semantics<parallel>], iteration_bounds = array<i64: 1>, scalar_prefetch = 0 : i64, scratch_operands = 0 : i64, tpu.core_type = #tpu.core_type<tc>, window_params = [{transform_indices = @transform_0, window_bounds = array<i64: 128, 50>}, {pipeline_mode = #tpu.pipeline_mode<synchronous>, transform_indices = @transform_1, window_bounds = array<i64: 64, 50>}, {pipeline_mode = #tpu.pipeline_mode<synchronous>, transform_indices = @transform_2, window_bounds = array<i64: 64, 1>}, {pipeline_mode = #tpu.pipeline_mode<synchronous>, transform_indices = @transform_3, window_bounds = array<i64: 32, 64>}, {pipeline_mode = #tpu.pipeline_mode<synchronous>, transform_indices = @transform_4, window_bounds = array<i64: 32, 1>}, {pipeline_mode = #tpu.pipeline_mode<synchronous>, transform_indices = @transform_5, window_bounds = array<i64: 16, 32>}, {pipeline_mode = #tpu.pipeline_mode<synchronous>, transform_indices = @transform_6, window_bounds = array<i64: 16, 1>}, {pipeline_mode = #tpu.pipeline_mode<synchronous>, transform_indices = @transform_7, window_bounds = array<i64: 16, 1>}, {pipeline_mode = #tpu.pipeline_mode<synchronous>, transform_indices = @transform_8, window_bounds = array<i64: 1, 1>}, {transform_indices = @transform_9, window_bounds = array<i64: 1, 128>}]} {
    %c0 = arith.constant 0 : index
    %c0_0 = arith.constant 0 : index
    %0 = vector.load %arg1[%c0, %c0_0] : memref<128x50xf32, #tpu.memory_space<vmem>>, vector<128x50xf32>
    %c0_1 = arith.constant 0 : index
    %c0_2 = arith.constant 0 : index
    %1 = vector.load %arg2[%c0_1, %c0_2] : memref<64x50xf32, #tpu.memory_space<vmem>>, vector<64x50xf32>
    %cst = arith.constant dense<0.000000e+00> : vector<64x128xf32>
    %2 = tpu.matmul %1, %0, %cst {dimension_numbers = #tpu.dot_dimension_numbers<[1], [1], [0], [0], [0, 0, 1, 0], [], []>} : vector<64x50xf32>, vector<128x50xf32>, vector<64x128xf32> -> vector<64x128xf32>
    %c0_3 = arith.constant 0 : index
    %c0_4 = arith.constant 0 : index
    %3 = vector.load %arg3[%c0_3, %c0_4] : memref<64x1xf32, #tpu.memory_space<vmem>>, vector<64x1xf32>
    %4 = vector.broadcast %3 : vector<64x1xf32> to vector<64x128xf32>
    %5 = arith.addf %2, %4 : vector<64x128xf32>
    %cst_5 = arith.constant 0.000000e+00 : f32
    %6 = vector.broadcast %cst_5 : f32 to vector<64x128xf32>
    %7 = arith.maximumf %5, %6 : vector<64x128xf32>
    %c0_6 = arith.constant 0 : index
    %c0_7 = arith.constant 0 : index
    %8 = vector.load %arg4[%c0_6, %c0_7] : memref<32x64xf32, #tpu.memory_space<vmem>>, vector<32x64xf32>
    %cst_8 = arith.constant dense<0.000000e+00> : vector<32x128xf32>
    %9 = tpu.matmul %8, %7, %cst_8 {dimension_numbers = #tpu.dot_dimension_numbers<[1], [0], [0], [1], [0, 0, 1, 1], [], []>} : vector<32x64xf32>, vector<64x128xf32>, vector<32x128xf32> -> vector<32x128xf32>
    %c0_9 = arith.constant 0 : index
    %c0_10 = arith.constant 0 : index
    %10 = vector.load %arg5[%c0_9, %c0_10] : memref<32x1xf32, #tpu.memory_space<vmem>>, vector<32x1xf32>
    %11 = vector.broadcast %10 : vector<32x1xf32> to vector<32x128xf32>
    %12 = arith.addf %9, %11 : vector<32x128xf32>
    %cst_11 = arith.constant 0.000000e+00 : f32
    %13 = vector.broadcast %cst_11 : f32 to vector<32x128xf32>
    %14 = arith.maximumf %12, %13 : vector<32x128xf32>
    %c0_12 = arith.constant 0 : index
    %c0_13 = arith.constant 0 : index
    %15 = vector.load %arg6[%c0_12, %c0_13] : memref<16x32xf32, #tpu.memory_space<vmem>>, vector<16x32xf32>
    %cst_14 = arith.constant dense<0.000000e+00> : vector<16x128xf32>
    %16 = tpu.matmul %15, %14, %cst_14 {dimension_numbers = #tpu.dot_dimension_numbers<[1], [0], [0], [1], [0, 0, 1, 1], [], []>} : vector<16x32xf32>, vector<32x128xf32>, vector<16x128xf32> -> vector<16x128xf32>
    %c0_15 = arith.constant 0 : index
    %c0_16 = arith.constant 0 : index
    %17 = vector.load %arg7[%c0_15, %c0_16] : memref<16x1xf32, #tpu.memory_space<vmem>>, vector<16x1xf32>
    %18 = vector.broadcast %17 : vector<16x1xf32> to vector<16x128xf32>
    %19 = arith.addf %16, %18 : vector<16x128xf32>
    %cst_17 = arith.constant 0.000000e+00 : f32
    %20 = vector.broadcast %cst_17 : f32 to vector<16x128xf32>
    %21 = arith.maximumf %19, %20 : vector<16x128xf32>
    %c0_18 = arith.constant 0 : index
    %c0_19 = arith.constant 0 : index
    %22 = vector.load %arg8[%c0_18, %c0_19] : memref<16x1xf32, #tpu.memory_space<vmem>>, vector<16x1xf32>
    %23 = vector.broadcast %22 : vector<16x1xf32> to vector<16x128xf32>
    %24 = arith.mulf %21, %23 : vector<16x128xf32>
    %cst_20 = arith.constant dense<0.000000e+00> : vector<128xf32>
    %25 = vector.multi_reduction <add>, %24, %cst_20 [0] : vector<16x128xf32> to vector<128xf32>
    %26 = vector.shape_cast %25 : vector<128xf32> to vector<1x128xf32>
    %c0_21 = arith.constant 0 : index
    %c0_22 = arith.constant 0 : index
    %27 = vector.load %arg9[%c0_21, %c0_22] : memref<1x1xf32, #tpu.memory_space<vmem>>, vector<1x1xf32>
    %28 = vector.broadcast %27 : vector<1x1xf32> to vector<1x128xf32>
    %29 = arith.addf %26, %28 : vector<1x128xf32>
    %30 = arith.negf %29 : vector<1x128xf32>
    %31 = math.exp %30 : vector<1x128xf32>
    %cst_23 = arith.constant 1.000000e+00 : f32
    %32 = vector.broadcast %cst_23 : f32 to vector<1x128xf32>
    %33 = arith.addf %32, %31 : vector<1x128xf32>
    %34 = arith.divf %32, %33 : vector<1x128xf32>
    %c0_24 = arith.constant 0 : index
    %c0_25 = arith.constant 0 : index
    %35 = vector.load %arg10[%c0_24, %c0_25] : memref<1x128xf32, #tpu.memory_space<vmem>>, vector<1x128xf32>
    tpu.vector_store %arg10[%c0_24, %c0_25], %34 {strides = array<i32>} : memref<1x128xf32, #tpu.memory_space<vmem>>, vector<1x128xf32>,
    return
  }
  func.func @transform_0(%arg0: i32) -> (i32, i32) {
    %c0_i32 = arith.constant 0 : i32
    %c0_i32_0 = arith.constant 0 : i32
    return %arg0, %c0_i32 : i32, i32
  }
  func.func @transform_1(%arg0: i32) -> (i32, i32) {
    %c0_i32 = arith.constant 0 : i32
    %c0_i32_0 = arith.constant 0 : i32
    %c0_i32_1 = arith.constant 0 : i32
    return %c0_i32, %c0_i32_0 : i32, i32
  }
  func.func @transform_2(%arg0: i32) -> (i32, i32) {
    %c0_i32 = arith.constant 0 : i32
    %c0_i32_0 = arith.constant 0 : i32
    %c0_i32_1 = arith.constant 0 : i32
    return %c0_i32, %c0_i32_0 : i32, i32
  }
  func.func @transform_3(%arg0: i32) -> (i32, i32) {
    %c0_i32 = arith.constant 0 : i32
    %c0_i32_0 = arith.constant 0 : i32
    %c0_i32_1 = arith.constant 0 : i32
    return %c0_i32, %c0_i32_0 : i32, i32
  }
  func.func @transform_4(%arg0: i32) -> (i32, i32) {
    %c0_i32 = arith.constant 0 : i32
    %c0_i32_0 = arith.constant 0 : i32
    %c0_i32_1 = arith.constant 0 : i32
    return %c0_i32, %c0_i32_0 : i32, i32
  }
  func.func @transform_5(%arg0: i32) -> (i32, i32) {
    %c0_i32 = arith.constant 0 : i32
    %c0_i32_0 = arith.constant 0 : i32
    %c0_i32_1 = arith.constant 0 : i32
    return %c0_i32, %c0_i32_0 : i32, i32
  }
  func.func @transform_6(%arg0: i32) -> (i32, i32) {
    %c0_i32 = arith.constant 0 : i32
    %c0_i32_0 = arith.constant 0 : i32
    %c0_i32_1 = arith.constant 0 : i32
    return %c0_i32, %c0_i32_0 : i32, i32
  }
  func.func @transform_7(%arg0: i32) -> (i32, i32) {
    %c0_i32 = arith.constant 0 : i32
    %c0_i32_0 = arith.constant 0 : i32
    %c0_i32_1 = arith.constant 0 : i32
    return %c0_i32, %c0_i32_0 : i32, i32
  }
  func.func @transform_8(%arg0: i32) -> (i32, i32) {
    %c0_i32 = arith.constant 0 : i32
    %c0_i32_0 = arith.constant 0 : i32
    %c0_i32_1 = arith.constant 0 : i32
    return %c0_i32, %c0_i32_0 : i32, i32
  }
  func.func @transform_9(%arg0: i32) -> (i32, i32) {
    %c0_i32 = arith.constant 0 : i32
    %c0_i32_0 = arith.constant 0 : i32
    return %c0_i32, %arg0 : i32, i32
  }
}

</mosaic_0001>

<bundles_post_ra>
// kernel: tpu_custom_call.1
= control target key start
LH: loop header
LB: loop body
LE: loop exit
PB: predicated region body
PF: predicated region fallthrough
CT: control target
= control target key end

     0   :  { %s996_s0 = inlined_call_operand.vmem [shape: f32[8,50], index: 0, kind: input, shape index: {}]   ;;  %s997_s1 = inlined_call_operand.vmem [shape: f32[64,50], index: 1, kind: input, shape index: {}]   ;;  %s998_s2 = inlined_call_operand.vmem [shape: f32[64,1], index: 2, kind: input, shape index: {}]   ;;  %s999_s3 = inlined_call_operand.vmem [shape: f32[32,64], index: 3, kind: input, shape index: {}]   ;;  %s1000_s4 = inlined_call_operand.vmem [shape: f32[32,1], index: 4, kind: input, shape index: {}]   ;;  %s1001_s5 = inlined_call_operand.vmem [shape: f32[16,32], index: 5, kind: input, shape index: {}]   ;;  %s1002_s6 = inlined_call_operand.vmem [shape: f32[16,1], index: 6, kind: input, shape index: {}]   ;;  %s1003_s7 = inlined_call_operand.vmem [shape: f32[16,1], index: 7, kind: input, shape index: {}]   ;;  %s1004_s8 = inlined_call_operand.<no memory space> [shape: f32[1,1], index: 8, kind: input, shape index: {}]   ;;  %s1005_s9 = inlined_call_operand.hbm [shape: f32[1,8], index: 9, kind: output, shape index: {}]  }
   0x1   :  { %v14_v0 = vstv %s1004_s8 }
   0x2   :  { %15 = vst [vmem:[#allocation2] sm:$0x1] %v14_v0 }
   0x3   :  { %v50_v1 = vld [vmem:[%s996_s0 + $0x78] sm:$0xff]  ;;  %vm107_vm0 = vcmask 408576   ;;  %v49_v2 = vld [vmem:[%s996_s0 + $0x70] sm:$0xff]  ;;  %v754_v3 = vmov 0   ;;  %v48_v4 = vld [vmem:[%s996_s0 + $0x68] sm:$0xff] }
   0x4   :  { %647 = vmatprep.subr.msk.mxu0 %vm107_vm0, %v50_v1  ;;  %726 = vset.pattern.permute.xlu0 %v754_v3  ;;  %v51_v5 = vld [vmem:[%s997_s1] sm:$0xff]  ;;  %v66_v7 = vld [vmem:[%s998_s2 + $0x38] sm:$0xff]  ;;  %v64_v8 = vld [vmem:[%s998_s2 + $0x28] sm:$0xff] }
   0x5   :  { %648 = vmatpush3.xpose.msk.msra.mxu0 %vm107_vm0, %v50_v1  ;;  %727 = vset.pattern.permute.xlu1 %v754_v3  ;;  %v47_v6 = vld [vmem:[%s996_s0 + $0x60] sm:$0xff]  ;;  %v65_v9 = vld [vmem:[%s998_s2 + $0x30] sm:$0xff]  ;;  %v46_v11 = vld [vmem:[%s996_s0 + $0x58] sm:$0xff] }
   0x6   :  { %649 = vmatprep.subr.msk.mxu0 %vm107_vm0, %v49_v2  ;;  %679 = vmatprep.mubr.msk.f32.mxu0 %vm107_vm0, %v51_v5  ;;  %v63_v10 = vld [vmem:[%s998_s2 + $0x20] sm:$0xff] }
   0x7   :  { %104 = vperm.xlu0 %726, %v66_v7   ;;  %94 = vperm.xlu1 %727, %v64_v8  }
   0x9   :  { %650 = vmatpush3.xpose.msk.msra.mxu0 %vm107_vm0, %v49_v2 }
   0xa   :  { %651 = vmatprep.subr.msk.mxu0 %vm107_vm0, %v48_v4 }
   0xb   :  { %99 = vperm.xlu0 %726, %v65_v9   ;;  %89 = vperm.xlu1 %727, %v63_v10  }
   0xd   :  { %652 = vmatpush3.xpose.msk.msra.mxu0 %vm107_vm0, %v48_v4 }
   0xe   :  { %653 = vmatprep.subr.msk.mxu0 %vm107_vm0, %v47_v6 }
   0xf   :  { %16 = vsyncpa [#allocation4], 0  ;;  %v62_v12 = vld [vmem:[%s998_s2 + $0x18] sm:$0xff]  ;;  %v61_v13 = vld [vmem:[%s998_s2 + $0x10] sm:$0xff]  ;;  %vm321_vm1 = vcmask 523264   ;;  %vm437_vm2 = vcmask 261120  }
  0x10   :  { %v45_v14 = vld [vmem:[%s996_s0 + $0x50] sm:$0xff]  ;;  %84 = vperm.xlu0 %726, %v62_v12   ;;  %79 = vperm.xlu1 %727, %v61_v13   ;;  %v60_v15 = vld [vmem:[%s998_s2 + $0x8] sm:$0xff]  ;;  %v59_v16 = vld [vmem:[%s998_s2] sm:$0xff] }
  0x11   :  { %654 = vmatpush3.xpose.msk.msra.mxu0 %vm107_vm0, %v47_v6  ;;  %v44_v17 = vld [vmem:[%s996_s0 + $0x48] sm:$0xff]  ;;  %v300_v18 = vld [vmem:[%s1000_s4 + $0x18] sm:$0xff]  ;;  %v299_v19 = vld [vmem:[%s1000_s4 + $0x10] sm:$0xff] }
  0x12   :  { %655 = vmatprep.subr.msk.mxu0 %vm107_vm0, %v46_v11  ;;  %v43_v20 = vld [vmem:[%s996_s0 + $0x40] sm:$0xff]  ;;  %v298_v21 = vld [vmem:[%s1000_s4 + $0x8] sm:$0xff]  ;;  %v42_v23 = vld [vmem:[%s996_s0 + $0x38] sm:$0xff] }
  0x13   :  { %v297_v22 = vld [vmem:[%s1000_s4] sm:$0xff]  ;;  %v426_v25 = vld [vmem:[%s1002_s6 + $0x8] sm:$0xff]  ;;  %v41_v26 = vld [vmem:[%s996_s0 + $0x30] sm:$0xff] }
  0x14   :  { %74 = vperm.xlu0 %726, %v60_v15   ;;  %69 = vperm.xlu1 %727, %v59_v16   ;;  %v425_v24 = vld [vmem:[%s1002_s6] sm:$0xff]  ;;  %v522_v28 = vld [vmem:[%s1003_s7 + $0x8] sm:$0xff]  ;;  %v38_v32 = vld [vmem:[%s996_s0 + $0x18] sm:$0xff] }
  0x15   :  { %656 = vmatpush3.xpose.msk.msra.mxu0 %vm107_vm0, %v46_v11  ;;  %v521_v27 = vld [vmem:[%s1003_s7] sm:$0xff]  ;;  %v40_v29 = vld [vmem:[%s996_s0 + $0x28] sm:$0xff]  ;;  %v37_v33 = vld [vmem:[%s996_s0 + $0x10] sm:$0xff] }
  0x16   :  { %657 = vmatprep.subr.msk.mxu0 %vm107_vm0, %v45_v14  ;;  %v542_v30 = vld [vmem:[#allocation2] sm:$0x1]  ;;  %v36_v34 = vld [vmem:[%s996_s0 + $0x8] sm:$0xff]  ;;  %v53_v37 = vld [vmem:[%s997_s1 + $0x10] sm:$0xff] }
  0x17   :  { %v39_v31 = vld [vmem:[%s996_s0 + $0x20] sm:$0xff]  ;;  %v52_v36 = vld [vmem:[%s997_s1 + $0x8] sm:$0xff]  ;;  %v54_v38 = vld [vmem:[%s997_s1 + $0x18] sm:$0xff] }
  0x18   :  { %318 = vperm.xlu0 %726, %v300_v18   ;;  %313 = vperm.xlu1 %727, %v299_v19   ;;  %v35_v35 = vld [vmem:[%s996_s0] sm:$0xff]  ;;  %v56_v40 = vld [vmem:[%s997_s1 + $0x28] sm:$0xff]  ;;  %v57_v41 = vld [vmem:[%s997_s1 + $0x30] sm:$0xff] }
  0x19   :  { %658 = vmatpush3.xpose.msk.msra.mxu0 %vm107_vm0, %v45_v14  ;;  %v55_v39 = vld [vmem:[%s997_s1 + $0x20] sm:$0xff]  ;;  %v58_v42 = vld [vmem:[%s997_s1 + $0x38] sm:$0xff]  ;;  %v294_v12 = vld [vmem:[%s999_s3 + $0x8] sm:$0xff] }
  0x1a   :  { %659 = vmatprep.subr.msk.mxu0 %vm107_vm0, %v44_v17  ;;  %v293_v43 = vld [vmem:[%s999_s3] sm:$0xff]  ;;  %v295_v13 = vld [vmem:[%s999_s3 + $0x10] sm:$0xff]  ;;  %v296_v14 = vld [vmem:[%s999_s3 + $0x18] sm:$0xff] }
  0x1b   :  { %707 = vmatprep.mubr.msk.f32.mxu1 %vm321_vm1, %v293_v43  ;;  %v423_v15 = vld [vmem:[%s1001_s5] sm:$0xff] }
  0x1c   :  { %308 = vperm.xlu0 %726, %v298_v21   ;;  %303 = vperm.xlu1 %727, %v297_v22  }
  0x1d   :  { %660 = vmatpush3.xpose.msk.msra.mxu0 %vm107_vm0, %v44_v17 }
  0x1e   :  { %661 = vmatprep.subr.msk.mxu0 %vm107_vm0, %v43_v20 }
  0x20   :  { %429 = vperm.xlu0 %726, %v425_v24   ;;  %434 = vperm.xlu1 %727, %v426_v25  }
  0x21   :  { %662 = vmatpush3.xpose.msk.msra.mxu0 %vm107_vm0, %v43_v20 }
  0x22   :  { %663 = vmatprep.subr.msk.mxu0 %vm107_vm0, %v42_v23 }
  0x24   :  { %525 = vperm.xlu0 %726, %v521_v27   ;;  %530 = vperm.xlu1 %727, %v522_v28  }
  0x25   :  { %664 = vmatpush3.xpose.msk.msra.mxu0 %vm107_vm0, %v42_v23 }
  0x26   :  { %665 = vmatprep.subr.msk.mxu0 %vm107_vm0, %v41_v26 }
  0x28   :  { %545 = vperm.xlu0 %726, %v542_v30  }
  0x29   :  { %666 = vmatpush3.xpose.msk.msra.mxu0 %vm107_vm0, %v41_v26 }
  0x2a   :  { %667 = vmatprep.subr.msk.mxu0 %vm107_vm0, %v40_v29 }
  0x2d   :  { %668 = vmatpush3.xpose.msk.msra.mxu0 %vm107_vm0, %v40_v29 }
  0x2e   :  { %669 = vmatprep.subr.msk.mxu0 %vm107_vm0, %v39_v31 }
  0x31   :  { %670 = vmatpush3.xpose.msk.msra.mxu0 %vm107_vm0, %v39_v31 }
  0x32   :  { %671 = vmatprep.subr.msk.mxu0 %vm107_vm0, %v38_v32 }
  0x35   :  { %672 = vmatpush3.xpose.msk.msra.mxu0 %vm107_vm0, %v38_v32  ;;  %v424_v32 = vld [vmem:[%s1001_s5 + $0x8] sm:$0xff]  ;;  %s755_s5 = smov [#allocation3]  }
  0x36   :  { %673 = vmatprep.subr.msk.mxu0 %vm107_vm0, %v37_v33  ;;  %s566_s24 = sshll.u32 %s755_s5, 4  ;;  %s567_s24 = int_to_ptr.vmem [resolvable:$true] %s566_s24 }
  0x37   :  { %s732_s25 = scalar_lea.vmem %s567_s24, 16  ;;  %s736_s26 = scalar_lea.vmem %s567_s24, 32 }
  0x38   :  { %p733_p0 = scmp.ne.s32.totalorder %s567_s24, %s732_s25  ;;  %p737_p1 = scmp.lt.s32.totalorder %s567_s24, %s567_s24 }
  0x39   :  { %674 = vmatpush3.xpose.msk.msra.mxu0 %vm107_vm0, %v37_v33  ;;  %p738_p2 = scmp.lt.s32.totalorder %s736_s26, %s732_s25 }
  0x3a   :  { %675 = vmatprep.subr.msk.mxu0 %vm107_vm0, %v36_v34 }
  0x3b   :  { %p739_p3 = por %p738_p2, %p737_p1 }
  0x3d   :  { %676 = vmatpush3.xpose.msk.msra.mxu0 %vm107_vm0, %v36_v34  ;;  %p740_p4 = pnand %p739_p3, %p733_p0 }
  0x3e   :  { %677 = vmatprep.subr.msk.mxu0 %vm107_vm0, %v35_v35 }
  0x41   :  { %678 = vmatpush3.xpose.msk.msra.mxu0 %vm107_vm0, %v35_v35 }
  0x44   :  { %680 = vmatmul.mubr.msk.f32.vlgmr.msra.gmra.mxu0 %vm107_vm0, %v52_v36 }
  0x45   :  { %682 = vmatprep.mubr.msk.f32.mxu0 %vm107_vm0, %v53_v37 }
  0x48   :  { %683 = vmatmul.mubr.msk.f32.gmra.mxu0 %vm107_vm0, %v54_v38 }
  0x49   :  { %685 = vmatprep.mubr.msk.f32.mxu0 %vm107_vm0, %v55_v39 }
  0x4c   :  { %686 = vmatmul.mubr.msk.f32.gmra.mxu0 %vm107_vm0, %v56_v40 }
  0x4d   :  { %688 = vmatprep.mubr.msk.f32.mxu0 %vm107_vm0, %v57_v41 }
  0x50   :  { %689 = vmatmul.mubr.msk.f32.gmra.mxu0 %vm107_vm0, %v58_v42 }
  0x82   :  { %v105_v46 = vpop.permute.xlu0 %104  ;;  %v95_v48 = vpop.permute.xlu1 %94 }
  0x86   :  { %v100_v51 = vpop.permute.xlu0 %99  ;;  %v90_v53 = vpop.permute.xlu1 %89 }
  0x8b   :  { %v85_v60 = vpop.permute.xlu0 %84  ;;  %v80_v63 = vpop.permute.xlu1 %79 }
  0x8f   :  { %v75_v4 = vpop.permute.xlu0 %74  ;;  %v70_v7 = vpop.permute.xlu1 %69 }
  0x93   :  { %v319_v16 = vpop.permute.xlu0 %318  ;;  %v314_v18 = vpop.permute.xlu1 %313 }
  0x97   :  { %v309_v22 = vpop.permute.xlu0 %308  ;;  %v304_v27 = vpop.permute.xlu1 %303 }
  0x9b   :  { %v430_v33 = vpop.permute.xlu0 %429  ;;  %v435_v34 = vpop.permute.xlu1 %434 }
  0x9f   :  { %v526_v41 = vpop.permute.xlu0 %525  ;;  %v531_v42 = vpop.permute.xlu1 %530 }
 0x104   :  { %v681_v44 = vpop.f32.mrf.mxu0 }
 0x105   :  { %v252_v5 = vadd.f32 %v681_v44, %v75_v4 }
 0x106   :  { %v246_v45 = vpop.f32.mrf.mxu0 }
 0x107   :  { %v247_v8 = vadd.f32 %v246_v45, %v70_v7  ;;  %v286_v10 = vmax.f32 %v252_v5, 0.0  ;;  %v548_v45 = vlaneseq }
 0x108   :  { %v684_v47 = vpop.f32.mrf.mxu0 }
 0x109   :  { %v262_v0 = vadd.f32 %v684_v47, %v85_v60  ;;  %v285_v11 = vmax.f32 %v247_v8, 0.0 }
 0x10a   :  { %v256_v49 = vpop.f32.mrf.mxu0 }
 0x10b   :  { %v257_v2 = vadd.f32 %v256_v49, %v80_v63  ;;  %v288_v6 = vmax.f32 %v262_v0, 0.0 }
 0x10c   :  { %v687_v50 = vpop.f32.mrf.mxu0 }
 0x10d   :  { %v272_v57 = vadd.f32 %v687_v50, %v95_v48  ;;  %v287_v9 = vmax.f32 %v257_v2, 0.0  ;;  %v549_v48 = vshrl.u32 %v548_v45, 7 }
 0x10e   :  { %v266_v52 = vpop.f32.mrf.mxu0 }
 0x10f   :  { %v267_v61 = vadd.f32 %v266_v52, %v90_v53  ;;  %v290_v1 = vmax.f32 %v272_v57, 0.0  ;;  %v546_v53 = vpop.permute.xlu0 %545 }
 0x110   :  { %v690_v54 = vpop.f32.mrf.mxu0 }
 0x111   :  { %v282_v55 = vadd.f32 %v690_v54, %v105_v46  ;;  %v289_v3 = vmax.f32 %v267_v61, 0.0 }
 0x112   :  { %v276_v56 = vpop.f32.mrf.mxu0 }
 0x113   :  { %v292_v58 = vmax.f32 %v282_v55, 0.0  ;;  %v277_v59 = vadd.f32 %v276_v56, %v100_v51  ;;  %v550_v51 = vsub.s32 0, %v549_v48 }
 0x115   :  { %v291_v62 = vmax.f32 %v277_v59, 0.0  ;;  %691 = vmatprep.subr.mxu1 %v292_v58  ;;  %v551_v55 = vrot.slane %v546_v53, %v550_v51 }
 0x116   :  { %692 = vmatpush3.msra.mxu1 %v292_v58 }
 0x117   :  { %693 = vmatprep.subr.mxu1 %v291_v62 }
 0x118   :  { %694 = vmatpush3.msra.mxu1 %v291_v62 }
 0x119   :  { %695 = vmatprep.subr.mxu1 %v290_v1 }
 0x11a   :  { %696 = vmatpush3.msra.mxu1 %v290_v1 }
 0x11b   :  { %697 = vmatprep.subr.mxu1 %v289_v3 }
 0x11c   :  { %698 = vmatpush3.msra.mxu1 %v289_v3 }
 0x11d   :  { %699 = vmatprep.subr.mxu1 %v288_v6 }
 0x11e   :  { %700 = vmatpush3.msra.mxu1 %v288_v6 }
 0x11f   :  { %701 = vmatprep.subr.mxu1 %v287_v9 }
 0x120   :  { %702 = vmatpush3.msra.mxu1 %v287_v9 }
 0x121   :  { %703 = vmatprep.subr.mxu1 %v286_v10 }
 0x122   :  { %704 = vmatpush3.msra.mxu1 %v286_v10 }
 0x123   :  { %705 = vmatprep.subr.mxu1 %v285_v11 }
 0x124   :  { %706 = vmatpush3.msra.mxu1 %v285_v11 }
 0x125   :  { %708 = vmatmul.mubr.msk.f32.vlgmr.msra.gmra.mxu1 %vm321_vm1, %v294_v12 }
 0x126   :  { %710 = vmatprep.mubr.msk.f32.mxu1 %vm321_vm1, %v295_v13 }
 0x129   :  { %711 = vmatmul.mubr.msk.f32.gmra.mxu1 %vm321_vm1, %v296_v14 }
 0x12a   :  { %721 = vmatprep.mubr.msk.f32.mxu1 %vm437_vm2, %v423_v15 }
 0x1e5   :  { %v709_v17 = vpop.f32.mrf.mxu1 }
 0x1e6   :  { %v406_v24 = vadd.f32 %v709_v17, %v309_v22 }
 0x1e7   :  { %v400_v19 = vpop.f32.mrf.mxu1 }
 0x1e8   :  { %v401_v28 = vadd.f32 %v400_v19, %v304_v27  ;;  %v420_v30 = vmax.f32 %v406_v24, 0.0 }
 0x1e9   :  { %v712_v20 = vpop.f32.mrf.mxu1 }
 0x1ea   :  { %v416_v21 = vadd.f32 %v712_v20, %v319_v16  ;;  %v419_v31 = vmax.f32 %v401_v28, 0.0 }
 0x1eb   :  { %v410_v23 = vpop.f32.mrf.mxu1 }
 0x1ec   :  { %v422_v25 = vmax.f32 %v416_v21, 0.0  ;;  %v411_v26 = vadd.f32 %v410_v23, %v314_v18 }
 0x1ee   :  { %v421_v29 = vmax.f32 %v411_v26, 0.0  ;;  %713 = vmatprep.subr.mxu1 %v422_v25 }
 0x1ef   :  { %714 = vmatpush3.msra.mxu1 %v422_v25 }
 0x1f0   :  { %715 = vmatprep.subr.mxu1 %v421_v29 }
 0x1f1   :  { %716 = vmatpush3.msra.mxu1 %v421_v29 }
 0x1f2   :  { %717 = vmatprep.subr.mxu1 %v420_v30 }
 0x1f3   :  { %718 = vmatpush3.msra.mxu1 %v420_v30 }
 0x1f4   :  { %719 = vmatprep.subr.mxu1 %v419_v31 }
 0x1f5   :  { %720 = vmatpush3.msra.mxu1 %v419_v31 }
 0x1f6   :  { %722 = vmatmul.mubr.msk.f32.vlgmr.msra.gmra.mxu1 %vm437_vm2, %v424_v32 }
 0x2b6   :  { %v723_v35 = vpop.f32.mrf.mxu1 }
 0x2b7   :  { %v516_v36 = vadd.f32 %v723_v35, %v435_v34 }
 0x2b8   :  { %v510_v37 = vpop.f32.mrf.mxu1 }
 0x2b9   :  { %v520_v38 = vmax.f32 %v516_v36, 0.0  ;;  %v511_v39 = vadd.f32 %v510_v37, %v430_v33 }
 0x2bb   :  { %v519_v40 = vmax.f32 %v511_v39, 0.0  ;;  %v534_v43 = vmul.f32 %v531_v42, %v520_v38 }
 0x2bd   :  { %v533_v44 = vmul.f32 %v526_v41, %v519_v40 }
 0x2bf   :  { %v535_v46 = vadd.f32 %v534_v43, %v533_v44 }
 0x2c1   :  { %v536_v47 = vrot.slane %v535_v46, 4 }
 0x2c3   :  { %v537_v49 = vadd.f32 %v536_v47, %v535_v46 }
 0x2c5   :  { %v538_v50 = vrot.slane %v537_v49, 2 }
 0x2c7   :  { %v539_v52 = vadd.f32 %v538_v50, %v537_v49 }
 0x2c9   :  { %v540_v54 = vrot.slane %v539_v52, 1 }
 0x2cb   :  { %v541_v56 = vadd.f32 %v540_v54, %v539_v52 }
 0x2cd   :  { %v552_v57 = vadd.f32 %v551_v55, %v541_v56 }
 0x2cf   :  { %v604_v58 = vmul.f32 -1.442695, %v552_v57 }
 0x2d1   :  { %728 = vpow2.f32 %v604_v58 }
 0x2de   :  { %v729_v59 = vpop.eup %728 }
 0x2df   :  { %v556_v60 = vadd.f32 1.0, %v729_v59 }
 0x2e1   :  { %730 = vrcp.f32 %v556_v60 }
 0x2ee   :  { %v731_v61 = vpop.eup %730 }
 0x2ef   :  { %559 = vst [vmem:[#allocation3] sm:$0x1] %v731_v61 }
 0x2f0   :  { %743 = shalt.err (!%p740_p4)
}
 0x2f1   :  { %569 = dma.vmem_to_hbm [thread:$0]  %s567_s24, 16, %s1005_s9, [#allocation4]  }
 0x2f2   :  { %752 = dma.done.wait [#allocation4], 16  }
 0x2f3   :  { %753 = vsyncadd [#allocation4], 4294967280 }
 0x2f4   :  { %573 = vsyncpa [#allocation4], 1 }

</bundles_post_ra>
